<compile_context>
chip_gen: v5e
topology: v5e:2x2
jax: 0.10.0
libtpu: 0.0.40
codegen_flags: <defaults>
</compile_context>

<pallas_src>
import jax
import jax.numpy as jnp
from jax.experimental import pallas as pl
from jax.experimental.pallas import tpu as pltpu


def _round_up(v, m):
    return ((v + m - 1) // m) * m


def attention_gate_kernel(g_ref, x_ref, wg_ref, wx_ref, wpsi_ref, o_ref):
    # g_ref: (1, Cg, TS), x_ref/o_ref: (1, Cl, TS); weights are tiny residents
    # (constant index_map, pre-cast in the wrapper -> no per-step casts).
    g = g_ref[0]                      # (Cg, TS), input dtype (bf16 ok on MXU)
    x = x_ref[0]                      # (Cl, TS)

    # 1x1x1 convs == channel-mixing matmuls, spatial on the lane axis (MXU),
    # accumulation in f32.
    g1 = jnp.dot(wg_ref[...], g, preferred_element_type=jnp.float32)   # (Co, TS)
    x1 = jnp.dot(wx_ref[...], x, preferred_element_type=jnp.float32)   # (Co, TS)
    h = jnp.maximum(g1 + x1, 0.0)                                      # (Co, TS) f32

    # psi: (1, Co) x (Co, TS) matmul has M=1 -> do it as a VPU multiply +
    # sublane (XLU) reduction instead of wasting an MXU push/drain.
    psi = jax.nn.sigmoid(
        jnp.sum(wpsi_ref[...] * h, axis=0, keepdims=True))             # (1, TS) f32

    # Gate the local features; psi broadcasts over the Cl sublanes.
    o_ref[0] = (x * psi.astype(x_ref.dtype)).astype(o_ref.dtype)


def attention_gate(g, x, wg, wx, wpsi, *, vmem_budget_bytes=24 * 1024 * 1024):
    """g: (B, Cg, D, H, W), x: (B, Cl, D, H, W);
    wg: (Co, Cg), wx: (Co, Cl), wpsi: (1, Co). Returns (B, Cl, D, H, W)."""
    B, Cg, D, H, W = g.shape
    Cl = x.shape[1]
    Co = wg.shape[0]
    S = D * H * W

    # ---- tile sizing ------------------------------------------------------
    # Per-lane VMEM cost: double-buffered I/O tiles + f32 intermediates
    # (g1, x1, h, psi live in f32 inside the kernel).
    itemsize = jnp.dtype(x.dtype).itemsize
    io_bytes_per_lane = (Cg + 2 * Cl) * itemsize * 2          # 2x double-buffer
    interm_bytes_per_lane = (3 * Co + 2) * 4                  # f32 scratch
    bytes_per_lane = io_bytes_per_lane + interm_bytes_per_lane

    ts_cap = max(128, (vmem_budget_bytes // bytes_per_lane) // 128 * 128)
    if S <= ts_cap:
        ts = _round_up(S, 128)
    else:
        # Balance tiles instead of rounding S up to a multiple of ts_cap.
        n_tiles = -(-S // ts_cap)
        ts = _round_up(-(-S // n_tiles), 128)

    # Make sure megacore (v7x: 2 TCs) gets at least 2 independent grid points.
    n_tiles = -(-S // ts)
    if B * n_tiles < 2 and S > 128:
        ts = _round_up(-(-S // 2), 128)
        n_tiles = -(-S // ts)

    # vmem limit derived from the actual footprint (+25% + 2 MiB headroom),
    # capped at 64 MiB so it is valid on v7x physical VMEM.
    weight_bytes = (Co * Cg + Co * Cl + Co) * 4 * 2
    total_bytes = bytes_per_lane * ts + weight_bytes
    vmem_limit = int(min(64 * 1024 * 1024,
                         max(16 * 1024 * 1024,
                             total_bytes * 5 // 4 + (2 << 20))))

    # ---- layout plumbing (views only, no HBM passes) ----------------------
    g2 = g.reshape(B, Cg, S)
    x2 = x.reshape(B, Cl, S)
    wg_c = wg.astype(g.dtype)                 # consumed by the g-dot
    wx_c = wx.astype(x.dtype)                 # consumed by the x-dot
    wpsi_col = wpsi.reshape(Co, 1).astype(jnp.float32)   # multiplies f32 h

    grid = (B, pl.cdiv(S, ts))

    out = pl.pallas_call(
        attention_gate_kernel,
        out_shape=jax.ShapeDtypeStruct((B, Cl, S), x.dtype),
        grid=grid,
        in_specs=[
            pl.BlockSpec((1, Cg, ts), lambda b, s: (b, 0, s)),
            pl.BlockSpec((1, Cl, ts), lambda b, s: (b, 0, s)),
            pl.BlockSpec((Co, Cg), lambda b, s: (0, 0)),
            pl.BlockSpec((Co, Cl), lambda b, s: (0, 0)),
            pl.BlockSpec((Co, 1), lambda b, s: (0, 0)),
        ],
        out_specs=pl.BlockSpec((1, Cl, ts), lambda b, s: (b, 0, s)),
        compiler_params=pltpu.CompilerParams(
            dimension_semantics=("parallel", "parallel"),
            vmem_limit_bytes=vmem_limit,
        ),
    )(g2, x2, wg_c, wx_c, wpsi_col)

    return out.reshape(B, Cl, D, H, W)


def reference(g, x, wg, wx, wpsi):
    """Pure-JAX reference of the PyTorch AttentionGate forward."""
    B, Cg, D, H, W = g.shape
    Cl = x.shape[1]
    gf = g.reshape(B, Cg, -1).astype(jnp.float32)
    xf = x.reshape(B, Cl, -1).astype(jnp.float32)
    g1 = jnp.einsum("oc,bcs->bos", wg, gf)
    x1 = jnp.einsum("oc,bcs->bos", wx, xf)
    psi = jax.nn.sigmoid(jnp.einsum("oc,bcs->bos", wpsi,
                                    jnp.maximum(g1 + x1, 0.0)))   # (B, 1, S)
    out = xf * psi
    return out.reshape(x.shape).astype(x.dtype)


if __name__ == "__main__":
    # Conv3d-style NCDHW inputs, small shapes.
    B, Cg, Cl, Co = 2, 8, 4, 4

    key = jax.random.PRNGKey(0)
    k = jax.random.split(key, 9)
    wg = 0.3 * jax.random.normal(k[0], (Co, Cg), dtype=jnp.float32)
    wx = 0.3 * jax.random.normal(k[1], (Co, Cl), dtype=jnp.float32)
    wpsi = 0.3 * jax.random.normal(k[2], (1, Co), dtype=jnp.float32)

    # Test 1: S = 256 (lane-aligned); tiny VMEM budget forces TS=128 so the
    # spatial grid axis actually has 2 tiles (exercises the pipelined path).
    D1, H1, W1 = 4, 8, 8
    g1 = jax.random.normal(k[3], (B, Cg, D1, H1, W1), dtype=jnp.float32)
    x1 = jax.random.normal(k[4], (B, Cl, D1, H1, W1), dtype=jnp.float32)
    out1 = attention_gate(g1, x1, wg, wx, wpsi, vmem_budget_bytes=64 * 1024)
    out1 = jax.block_until_ready(out1)
    ref1 = reference(g1, x1, wg, wx, wpsi)
    assert out1.shape == x1.shape
    assert jnp.allclose(out1, ref1, atol=2e-5, rtol=2e-5), "test1 mismatch"

    # Test 2: ragged spatial size (S = 105 < 128) -> single partial edge block,
    # no wrapper-side padding (OOB lanes never written).
    D2, H2, W2 = 3, 5, 7
    g2 = jax.random.normal(k[5], (B, Cg, D2, H2, W2), dtype=jnp.float32)
    x2 = jax.random.normal(k[6], (B, Cl, D2, H2, W2), dtype=jnp.float32)
    out2 = attention_gate(g2, x2, wg, wx, wpsi)
    out2 = jax.block_until_ready(out2)
    ref2 = reference(g2, x2, wg, wx, wpsi)
    assert out2.shape == x2.shape
    assert jnp.allclose(out2, ref2, atol=2e-5, rtol=2e-5), "test2 mismatch"

    # Test 3: B = 1, ragged S = 288 -> megacore split kicks in (2 spatial
    # tiles) with a partial last block.
    D3, H3, W3 = 4, 8, 9
    g3 = jax.random.normal(k[7], (1, Cg, D3, H3, W3), dtype=jnp.float32)
    x3 = jax.random.normal(k[8], (1, Cl, D3, H3, W3), dtype=jnp.float32)
    out3 = attention_gate(g3, x3, wg, wx, wpsi)
    out3 = jax.block_until_ready(out3)
    ref3 = reference(g3, x3, wg, wx, wpsi)
    assert out3.shape == x3.shape
    assert jnp.allclose(out3, ref3, atol=2e-5, rtol=2e-5), "test3 mismatch"

    print("KERNEL_OK")
</pallas_src>

<mosaic_0001>
module attributes {stable_mosaic.version = 11 : i64} {
  func.func @attention_gate_kernel(%arg0: i32, %arg1: i32, %arg2: memref<1x8x256xf32, #tpu.memory_space<vmem>>, %arg3: memref<1x4x256xf32, #tpu.memory_space<vmem>>, %arg4: memref<4x8xf32, #tpu.memory_space<vmem>>, %arg5: memref<4x4xf32, #tpu.memory_space<vmem>>, %arg6: memref<4x1xf32, #tpu.memory_space<vmem>>, %arg7: memref<1x4x256xf32, #tpu.memory_space<vmem>>) attributes {dimension_semantics = [#tpu.dimension_semantics<parallel>, #tpu.dimension_semantics<parallel>], iteration_bounds = array<i64: 2, 1>, scalar_prefetch = 0 : i64, scratch_operands = 0 : i64, tpu.core_type = #tpu.core_type<tc>, window_params = [{transform_indices = @transform_0, window_bounds = array<i64: 1, 8, 256>}, {transform_indices = @transform_1, window_bounds = array<i64: 1, 4, 256>}, {pipeline_mode = #tpu.pipeline_mode<synchronous>, transform_indices = @transform_2, window_bounds = array<i64: 4, 8>}, {pipeline_mode = #tpu.pipeline_mode<synchronous>, transform_indices = @transform_3, window_bounds = array<i64: 4, 4>}, {pipeline_mode = #tpu.pipeline_mode<synchronous>, transform_indices = @transform_4, window_bounds = array<i64: 4, 1>}, {transform_indices = @transform_5, window_bounds = array<i64: 1, 4, 256>}]} {
    %c0 = arith.constant 0 : index
    %c0_0 = arith.constant 0 : index
    %c0_1 = arith.constant 0 : index
    %0 = vector.load %arg2[%c0, %c0_0, %c0_1] : memref<1x8x256xf32, #tpu.memory_space<vmem>>, vector<1x8x256xf32>
    %1 = vector.shape_cast %0 : vector<1x8x256xf32> to vector<8x256xf32>
    %c0_2 = arith.constant 0 : index
    %c0_3 = arith.constant 0 : index
    %c0_4 = arith.constant 0 : index
    %2 = vector.load %arg3[%c0_2, %c0_3, %c0_4] : memref<1x4x256xf32, #tpu.memory_space<vmem>>, vector<1x4x256xf32>
    %3 = vector.shape_cast %2 : vector<1x4x256xf32> to vector<4x256xf32>
    %c0_5 = arith.constant 0 : index
    %c0_6 = arith.constant 0 : index
    %4 = vector.load %arg4[%c0_5, %c0_6] : memref<4x8xf32, #tpu.memory_space<vmem>>, vector<4x8xf32>
    %cst = arith.constant dense<0.000000e+00> : vector<4x256xf32>
    %5 = tpu.matmul %4, %1, %cst {dimension_numbers = #tpu.dot_dimension_numbers<[1], [0], [0], [1], [0, 0, 1, 1], [], []>} : vector<4x8xf32>, vector<8x256xf32>, vector<4x256xf32> -> vector<4x256xf32>
    %c0_7 = arith.constant 0 : index
    %c0_8 = arith.constant 0 : index
    %6 = vector.load %arg5[%c0_7, %c0_8] : memref<4x4xf32, #tpu.memory_space<vmem>>, vector<4x4xf32>
    %cst_9 = arith.constant dense<0.000000e+00> : vector<4x256xf32>
    %7 = tpu.matmul %6, %3, %cst_9 {dimension_numbers = #tpu.dot_dimension_numbers<[1], [0], [0], [1], [0, 0, 1, 1], [], []>} : vector<4x4xf32>, vector<4x256xf32>, vector<4x256xf32> -> vector<4x256xf32>
    %8 = arith.addf %5, %7 : vector<4x256xf32>
    %cst_10 = arith.constant 0.000000e+00 : f32
    %9 = vector.broadcast %cst_10 : f32 to vector<4x256xf32>
    %10 = arith.maximumf %8, %9 : vector<4x256xf32>
    %c0_11 = arith.constant 0 : index
    %c0_12 = arith.constant 0 : index
    %11 = vector.load %arg6[%c0_11, %c0_12] : memref<4x1xf32, #tpu.memory_space<vmem>>, vector<4x1xf32>
    %12 = vector.broadcast %11 : vector<4x1xf32> to vector<4x256xf32>
    %13 = arith.mulf %12, %10 : vector<4x256xf32>
    %cst_13 = arith.constant dense<0.000000e+00> : vector<256xf32>
    %14 = vector.multi_reduction <add>, %13, %cst_13 [0] : vector<4x256xf32> to vector<256xf32>
    %15 = vector.shape_cast %14 : vector<256xf32> to vector<1x256xf32>
    %16 = arith.negf %15 : vector<1x256xf32>
    %17 = math.exp %16 : vector<1x256xf32>
    %cst_14 = arith.constant 1.000000e+00 : f32
    %18 = vector.broadcast %cst_14 : f32 to vector<1x256xf32>
    %19 = arith.addf %18, %17 : vector<1x256xf32>
    %20 = arith.divf %18, %19 : vector<1x256xf32>
    %21 = vector.broadcast %20 : vector<1x256xf32> to vector<4x256xf32>
    %22 = arith.mulf %3, %21 : vector<4x256xf32>
    %c0_15 = arith.constant 0 : index
    %c0_16 = arith.constant 0 : index
    %c0_17 = arith.constant 0 : index
    %23 = vector.load %arg7[%c0_15, %c0_16, %c0_17] : memref<1x4x256xf32, #tpu.memory_space<vmem>>, vector<1x4x256xf32>
    %24 = vector.shape_cast %23 : vector<1x4x256xf32> to vector<4x256xf32>
    %25 = vector.shape_cast %22 : vector<4x256xf32> to vector<1x4x256xf32>
    tpu.vector_store %arg7[%c0_15, %c0_16, %c0_17], %25 {strides = array<i32>} : memref<1x4x256xf32, #tpu.memory_space<vmem>>, vector<1x4x256xf32>,
    return
  }
  func.func @transform_0(%arg0: i32, %arg1: i32) -> (i32, i32, i32) {
    %c0_i32 = arith.constant 0 : i32
    %c0_i32_0 = arith.constant 0 : i32
    return %arg0, %c0_i32, %arg1 : i32, i32, i32
  }
  func.func @transform_1(%arg0: i32, %arg1: i32) -> (i32, i32, i32) {
    %c0_i32 = arith.constant 0 : i32
    %c0_i32_0 = arith.constant 0 : i32
    return %arg0, %c0_i32, %arg1 : i32, i32, i32
  }
  func.func @transform_2(%arg0: i32, %arg1: i32) -> (i32, i32) {
    %c0_i32 = arith.constant 0 : i32
    %c0_i32_0 = arith.constant 0 : i32
    %c0_i32_1 = arith.constant 0 : i32
    return %c0_i32, %c0_i32_0 : i32, i32
  }
  func.func @transform_3(%arg0: i32, %arg1: i32) -> (i32, i32) {
    %c0_i32 = arith.constant 0 : i32
    %c0_i32_0 = arith.constant 0 : i32
    %c0_i32_1 = arith.constant 0 : i32
    return %c0_i32, %c0_i32_0 : i32, i32
  }
  func.func @transform_4(%arg0: i32, %arg1: i32) -> (i32, i32) {
    %c0_i32 = arith.constant 0 : i32
    %c0_i32_0 = arith.constant 0 : i32
    %c0_i32_1 = arith.constant 0 : i32
    return %c0_i32, %c0_i32_0 : i32, i32
  }
  func.func @transform_5(%arg0: i32, %arg1: i32) -> (i32, i32, i32) {
    %c0_i32 = arith.constant 0 : i32
    %c0_i32_0 = arith.constant 0 : i32
    return %arg0, %c0_i32, %arg1 : i32, i32, i32
  }
}

</mosaic_0001>

<bundles_post_ra>
// kernel: tpu_custom_call.1
= control target key start
LH: loop header
LB: loop body
LE: loop exit
PB: predicated region body
PF: predicated region fallthrough
CT: control target
= control target key end

     0   :  { %s1146_s0 = inlined_call_operand.hbm [shape: f32[2,8,256], index: 0, kind: input, shape index: {}]   ;;  %s1147_s1 = inlined_call_operand.hbm [shape: f32[2,4,256], index: 1, kind: input, shape index: {}]   ;;  %s1148_s2 = inlined_call_operand.vmem [shape: f32[4,8], index: 2, kind: input, shape index: {}]   ;;  %s1149_s3 = inlined_call_operand.hbm [shape: f32[4,4], index: 3, kind: input, shape index: {}]   ;;  %s1150_s4 = inlined_call_operand.vmem [shape: f32[4,1], index: 4, kind: input, shape index: {}]   ;;  %s1151_s5 = inlined_call_operand.hbm [shape: f32[2,4,256], index: 5, kind: output, shape index: {}]  }
   0x1   :  { %1158 = sst [smem:[#allocation19_spill]] %s1149_s3 }
   0x2   :  { %10 = vsyncpa [#allocation3], 0 }
   0x3   :  { %12 = vsyncpa [#allocation3 + $0x1], 0 }
   0x4   :  { %13 = vsyncpa [#allocation6], 0 }
   0x5   :  { %15 = vsyncpa [#allocation6 + $0x1], 0 }
   0x6   :  { %16 = vsyncpa [#allocation4], 0 }
   0x7   :  { %18 = vsyncpa [#allocation4 + $0x1], 0  ;;  %s965_s18 = smov 0   ;;  %s967_s19 = smov 0  }
   0x8   :  { %s969_s20 = smov 0   ;;  %s971_s21 = smov 0  }
   0x9   :  { %s973_s22 = smov 0   ;;  %s975_s23 = smov 0  }
   0xa LB: > { %1159 = sst [smem:[#allocation13_spill]] %s911_s18  ;;  %s996_s24 = sadd.s32 4294967295, %s931_s23   ;;  %s931_s23 = sphi %s975_s23, %s24_s23   ;;  %s927_s22 = sphi %s973_s22, %s1182_s22   ;;  %s923_s21 = sphi %s971_s21, %s1181_s21   ;;  %s919_s20 = sphi %s969_s20, %s1177_s20   ;;  %s915_s19 = sphi %s967_s19, %s1180_s19   ;;  %s911_s18 = sphi %s965_s18, %s1179_s18  }
   0xb   : > { %1160 = sst [smem:[#allocation14_spill]] %s919_s20  ;;  %s632_s25 = sadd.s32 4294967294, %s931_s23  }
   0xc   : > { %p58_p0 = scmp.ne.s32.totalorder %s915_s19, %s911_s18  ;;  %p59_p1 = scmp.eq.s32.totalorder %s996_s24, 0 }
   0xd   : > { %p175_p2 = scmp.eq.s32.totalorder %s996_s24, 1  ;;  %p181_p3 = scmp.eq.s32.totalorder %s632_s25, 1 }
   0xe   : > { %p1005_p4 = por %p59_p1, %p58_p0  ;;  %p633_p5 = scmp.ge.s32.totalorder %s931_s23, 1 }
   0xf   : > { %p1010_p6 = por %p181_p3, %p58_p0  ;;  %p188_p7 = scmp.lt.s32.totalorder %s931_s23, 3 }
  0x10   : > { %s1164_s3 = sld [smem:[#allocation19_spill]]  ;;  %p635_p9 = scmp.ge.s32.totalorder %s931_s23, 2 }
  0x11   : > { %s1162_s27 = scalar_select %p1010_p6, 1, 0 }
  0x12   : > { %p1018_p8 = pnand %p633_p5, %p188_p7  ;;  %s933_s7 = smov [#allocation7]  }
  0x13   : > { %1163 = sst [smem:[#allocation15_spill]] %s1162_s27  ;;  %s205_s8 = sshll.u32 %s933_s7, 4  ;;  %s206_s8 = int_to_ptr.vmem [resolvable:$true] %s205_s8 }
  0x14   : > { %p673_p10 = pneg %p1018_p8  ;;  %s36_s9 = sadd.s32 1, %s927_s22 }
  0x15   : > { %p38_p12 = scmp.ge.s32.totalorder %s36_s9, 2  ;;  %s45_s10 = sadd.s32 1, %s919_s20 }
  0x16   : > { %s203_s30 = sshll.u32 %s1164_s3, 4  ;;  %p674_p11 = pnand %p673_p10, %p59_p1  ;;  %s204_s30 = int_to_ptr.hbm [resolvable:$true] %s203_s30 }
  0x17   : > { %p52_p13 = scmp.ne.s32.totalorder %s919_s20, %s915_s19  ;;  %p53_p0 = scmp.eq.s32.totalorder %s931_s23, 0 }
  0x18   : > { %676 = dma.hbm_to_vmem [thread:$0]  (!%p674_p11), %s204_s30, 64, %s206_s8, [#allocation6]  }
  0x19   : > { %s1184_s9 = smov (%p38_p12, %s36_s9), 0  ;;  %p1034_p3 = por %p53_p0, %p52_p13 }
  0x1a   : > { %1166 = sst [smem:[#allocation16_spill]] %s1184_s9  ;;  %p1040_p5 = por %p175_p2, %p52_p13 }
  0x1b   : > { %s40_s13 = ssub.s32 %s927_s22, %s1184_s9  ;;  %p689_p7 = scmp.lt.s32.totalorder %s931_s23, 2 }
  0x1c   : > { %s1168_s12 = scalar_select %p1040_p5, 1, 0 }
  0x1d   : > { %p43_p10 = scmp.eq.s32.totalorder %s40_s13, 0  ;;  %s219_s14 = sand.u32 1, %s919_s20  }
  0x1e   : > { %1169 = sst [smem:[#allocation17_spill]] %s1168_s12  ;;  %s636_s15 = sshll.u32 %s219_s14, 4 }
  0x1f   : > { %s1049_s16 = scalar_select %p43_p10, %s919_s20, %s45_s10  }
  0x20   : > { %s660_s17 = sshll.u32 %s927_s22, 4  ;;  %s223_s30 = scalar_lea.vmem [#allocation2], %s636_s15 }
  0x21   : > { %1170 = sst [smem:[#allocation18_spill]] %s1049_s16  ;;  %s230_s29 = scalar_lea.hbm %s1146_s0, %s660_s17 }
  0x22   : > { %s234_s7 = sshll.u32 %s223_s30, 4  ;;  %s232_s8 = sshll.u32 %s230_s29, 4  ;;  %s235_s7 = int_to_ptr.vmem [resolvable:$true] %s234_s7  ;;  %s233_s8 = int_to_ptr.hbm [resolvable:$true] %s232_s8 }
  0x23   : > { %p678_p2 = pnand %p689_p7, %p1034_p3  ;;  %s241_s3 = sand.u32 1, %s931_s23  }
  0x24   : > { %s639_s9 = sshll.u32 %s219_s14, 3  ;;  %s220_s13 = scalar_lea.sflag [#allocation3], %s219_s14 }
  0x25   : > { %680 = dma.hbm_to_vmem [thread:$0]  (!%p678_p2), %s233_s8, 256, %s235_s7, %s220_s13  }
  0x26   : > { %s661_s27 = sshll.u32 %s927_s22, 3  ;;  %s245_s20 = scalar_lea.vmem [#allocation5], %s639_s9 }
  0x27   : > { %s252_s16 = scalar_lea.hbm %s1147_s1, %s661_s27  ;;  %s256_s12 = sshll.u32 %s245_s20, 4  ;;  %s257_s12 = int_to_ptr.vmem [resolvable:$true] %s256_s12 }
  0x28   : > { %s254_s25 = sshll.u32 %s252_s16, 4  ;;  %s242_s15 = scalar_lea.sflag [#allocation6], %s241_s3  ;;  %s255_s25 = int_to_ptr.hbm [resolvable:$true] %s254_s25 }
  0x29   : > { %683 = dma.hbm_to_vmem [thread:$0]  (!%p678_p2), %s255_s25, 128, %s257_s12, %s242_s15  }
  0x2a   : > { %265 = sbr.rel (%p1018_p8) target bundleno = 245 (0xf5), region = 40  ;;  %s1065_s11 = sand.u32 (!%p1018_p8), 1, %s915_s19  }
  0x2b   : > { %s643_s14 = sshll.u32 (!%p1018_p8), %s1065_s11, 4  ;;  %s268_s17 = scalar_lea.sflag (!%p1018_p8), [#allocation3], %s1065_s11 }
  0x2c   : > { %s271_s18 = scalar_lea.vmem (!%p1018_p8), [#allocation2], %s643_s14 }
  0x2f   : > { %894 = dma.done.wait (%p1005_p4), %s268_s17, 256  }
  0x30   : > { %896 = vsyncadd (%p1005_p4), %s268_s17, 4294967040  ;;  %s277_s3 = sand.u32 1, %s996_s24   ;;  %s644_s20 = sshll.u32 %s1065_s11, 3 }
  0x31   : > { %s278_s27 = scalar_lea.sflag [#allocation6], %s277_s3  ;;  %s281_s6 = scalar_lea.vmem [#allocation5], %s644_s20 }
  0x32   : > { %898 = dma.done.wait (%p1005_p4), %s278_s27, 128  }
  0x33   : > { %900 = vsyncadd (%p1005_p4), %s278_s27, 4294967168 }
  0x34   : > { %902 = dma.done.wait (%p59_p1), [#allocation6], 64  }
  0x35   : > { %904 = vsyncadd (%p59_p1), [#allocation6], 4294967232  ;;  %v934_v0 = vmov 0   ;;  %vm380_vm0 = vcmask 64512   ;;  %v1085_v1 = vld [vmem:[%s281_s6] sm:$0xff]  ;;  %v323_v3 = vld [vmem:[%s271_s18 + $0x8] sm:$0xff] }
  0x36   : > { %742 = vset.pattern.permute.xlu0 %v934_v0  ;;  %v322_v2 = vld [vmem:[%s271_s18] sm:$0xff]  ;;  %328 = vst [vmem:[#allocation1] ss:$2 sm:$0xff] %v1085_v1  ;;  %419 = vmatpush.msra.mxu3 %v323_v3  ;;  %v325_v4 = vld [vmem:[%s1148_s2] sm:$0xf]  ;;  %vm335_vm1 = vcmask 1043456  }
  0x37   : > { %399 = vmatpush.msra.mxu2 %v322_v2  ;;  %652 = vmatmul.msk.f32.vlgmr.msra.gmra.mxu3 %vm380_vm0, %v325_v4  ;;  %v426_v5 = vld [vmem:[%s1150_s4] sm:$0xf]  ;;  %v326_v6 = vld [vmem:[#allocation7] sm:$0xf]  ;;  %vm331_vm2 = vcmask 31744   ;;  %s662_s16 = sshll.u32 %s923_s21, 3 }
  0x38   : > { %651 = vmatmul.msk.f32.vlgmr.msra.gmra.mxu2 %vm380_vm0, %v325_v4  ;;  %429 = vperm.xlu0 %742, %v426_v5   ;;  %s507_s30 = scalar_lea.hbm %s1151_s5, %s662_s16  ;;  %s318_s7 = scalar_lea.vmem [#allocation8], %s644_s20 }
  0x39   : > { %s509_s8 = sshll.u32 %s318_s7, 4  ;;  %s511_s13 = sshll.u32 %s507_s30, 4  ;;  %s510_s8 = int_to_ptr.vmem [resolvable:$true] %s509_s8  ;;  %s512_s13 = int_to_ptr.hbm [resolvable:$true] %s511_s13 }
  0x3a   : > { %s494_s10 = scalar_lea.sflag [#allocation4], %s1065_s11  ;;  %s855_s25 = sshra.s32 %s512_s13, 4  ;;  %s856_s25 = int_to_ptr.hbm [resolvable:$true] %s855_s25 }
  0x3b   : > { %s857_s15 = scalar_lea.hbm %s856_s25, 8  ;;  %s861_s18 = scalar_lea.hbm %s1151_s5, 16 }
  0x3c   : > { %p858_p1 = scmp.ne.s32.totalorder %s856_s25, %s857_s15  ;;  %p862_p11 = scmp.lt.s32.totalorder %s856_s25, %s1151_s5 }
  0x3d   : > { %v329_v7 = vld.sshfl [vmem:[#allocation1] sm:$0xff pattern:$0x75316420]  ;;  %v330_v8 = vld.sshfl [vmem:[#allocation1 + $0x8] sm:$0xff pattern:$0x75316420]  ;;  %p863_p12 = scmp.lt.s32.totalorder %s861_s18, %s857_s15 }
  0x3e   : > { %647 = vmatpush.msk.msra.mxu0 %vm335_vm1, %v329_v7  ;;  %649 = vmatpush.msk.msra.mxu1 %vm335_vm1, %v330_v8  ;;  %p859_p4 = pnand %p858_p1, %p1040_p5 }
  0x3f   : > { %648 = vmatmul.msk.f32.vlgmr.msra.gmra.mxu0 %vm331_vm2, %v326_v6  ;;  %650 = vmatmul.msk.f32.vlgmr.msra.gmra.mxu1 %vm331_vm2, %v326_v6  ;;  %p864_p13 = por %p863_p12, %p862_p11 }
  0x40   : > { %p860_p8 = pneg %p859_p4 }
  0x42   : > { %p865_p0 = pnand %p864_p13, %p860_p8 }
  0xaa   : > { %v430_v15 = vpop.permute.xlu0 %429 }
  0xba   : > { %v421_v10 = vpop.f32.mrf.mxu3 }
  0xbb   : > { %v401_v9 = vpop.f32.mrf.mxu2 }
  0xbc   : > { %v357_v11 = vpop.f32.mrf.mxu0  ;;  %v377_v12 = vpop.f32.mrf.mxu1 }
  0xbd   : > { %v402_v13 = vadd.f32 %v401_v9, %v357_v11  ;;  %v422_v14 = vadd.f32 %v421_v10, %v377_v12 }
  0xbf   : > { %v424_v16 = vmax.f32 %v402_v13, 0.0  ;;  %v425_v17 = vmax.f32 %v422_v14, 0.0 }
  0xc1   : > { %v432_v18 = vmul.f32 %v430_v15, %v424_v16  ;;  %v433_v19 = vmul.f32 %v430_v15, %v425_v17 }
  0xc3   : > { %v434_v20 = vsel %vm335_vm1, %v432_v18, 0.0  ;;  %v441_v21 = vsel %vm335_vm1, %v433_v19, 0.0 }
  0xc4   : > { %v435_v22 = vrot.slane %v434_v20, 4  ;;  %v442_v23 = vrot.slane %v441_v21, 4 }
  0xc6   : > { %v436_v24 = vadd.f32 %v435_v22, %v434_v20  ;;  %v443_v25 = vadd.f32 %v442_v23, %v441_v21 }
  0xc8   : > { %v437_v26 = vrot.slane %v436_v24, 2  ;;  %v444_v27 = vrot.slane %v443_v25, 2 }
  0xca   : > { %v438_v28 = vadd.f32 %v437_v26, %v436_v24  ;;  %v445_v29 = vadd.f32 %v444_v27, %v443_v25 }
  0xcc   : > { %v439_v30 = vrot.slane %v438_v28, 1  ;;  %v446_v31 = vrot.slane %v445_v29, 1 }
  0xce   : > { %v440_v32 = vadd.f32 %v439_v30, %v438_v28  ;;  %v447_v33 = vadd.f32 %v446_v31, %v445_v29 }
  0xd0   : > { %v653_v34 = vmul.f32 -1.442695, %v440_v32  ;;  %v654_v35 = vmul.f32 -1.442695, %v447_v33 }
  0xd2   : > { %743 = vpow2.f32 %v653_v34 }
  0xd3   : > { %745 = vpow2.f32 %v654_v35 }
  0xd8   : > { %v744_v36 = vpop.eup %743 }
  0xd9   : > { %v746_v37 = vpop.eup %745  ;;  %v454_v38 = vadd.f32 1.0, %v744_v36 }
  0xda   : > { %v455_v39 = vadd.f32 1.0, %v746_v37 }
  0xdb   : > { %747 = vrcp.f32 %v454_v38  ;;  %vm461_vm5 = vweird.f32 %v454_v38  ;;  %v467_v51 = vand.u32 2147483648, %v454_v38  ;;  %v465_v53 = vand.u32 2147483647, %v454_v38 }
  0xdc   : > { %749 = vrcp.f32 %v455_v39  ;;  %v482_v47 = vand.u32 2147483648, %v455_v39  ;;  %v480_v49 = vand.u32 2147483647, %v455_v39  ;;  %vm476_vm7 = vweird.f32 %v455_v39 }
  0xdd   : > { %v468_v58 = vor.u32 1.1754944e-38, %v467_v51  ;;  %vm466_vm10 = vcmp.eq.f32.partialorder %v465_v53, 8.507059e+37 }
  0xde   : > { %v483_v55 = vor.u32 1.1754944e-38, %v482_v47  ;;  %vm481_vm9 = vcmp.eq.f32.partialorder %v480_v49, 8.507059e+37 }
  0xe1   : > { %v748_v40 = vpop.eup %747 }
  0xe2   : > { %v750_v41 = vpop.eup %749  ;;  %v457_v42 = vmul.f32 %v748_v40, %v454_v38  ;;  %vm462_vm3 = vweird.f32 %v748_v40 }
  0xe3   : > { %v472_v43 = vmul.f32 %v750_v41, %v455_v39  ;;  %vm477_vm4 = vweird.f32 %v750_v41  ;;  %vm1099_vm6 = vmor %vm461_vm5, %vm462_vm3 }
  0xe4   : > { %v458_v44 = vsub.f32 1.0, %v457_v42  ;;  %vm478_vm8 = vmor %vm476_vm7, %vm477_vm4 }
  0xe5   : > { %v473_v45 = vsub.f32 1.0, %v472_v43 }
  0xe6   : > { %v459_v46 = vmul.f32 %v748_v40, %v458_v44 }
  0xe7   : > { %v474_v48 = vmul.f32 %v750_v41, %v473_v45 }
  0xe8   : > { %v460_v50 = vadd.f32 %v748_v40, %v459_v46 }
  0xe9   : > { %v475_v54 = vadd.f32 %v750_v41, %v474_v48 }
  0xea   : > { %v464_v56 = vsel %vm1099_vm6, %v748_v40, %v460_v50 }
  0xeb   : > { %v479_v57 = vsel %vm478_vm8, %v750_v41, %v475_v54  ;;  %v469_v61 = vsel %vm466_vm10, %v468_v58, %v464_v56 }
  0xec   : > { %v484_v59 = vsel %vm481_vm9, %v483_v55, %v479_v57 }
  0xed   : > { %v488_v60 = vrot.slane %v484_v59, 4 }
  0xef   : > { %v489_v62 = vsel %vm335_vm1, %v469_v61, %v488_v60 }
  0xf0   : > { %v491_v63 = vmul.f32 %v489_v62, %v1085_v1 }
  0xf2   : > { %492 = vst [vmem:[%s318_s7] sm:$0xff] %v491_v63 }
  0xf3   : > { %868 = shalt.err (!%p865_p0)
}
  0xf4   : > { %671 = dma.vmem_to_hbm [thread:$0]  (%p1040_p5), %s510_s8, 128, %s512_s13, %s494_s10  }
  0xf5 PF: > { %s1174_s11 = sld [smem:[#allocation13_spill]]  ;;  %p685_p3 = pnand %p635_p9, %p1010_p6 }
  0xf7   : > { %p686_p7 = pneg %p685_p3 }
  0xfb   : > { %s523_s6 = sand.u32 1, %s1174_s11  }
  0xfc   : > { %s524_s9 = scalar_lea.sflag [#allocation4], %s523_s6 }
  0xfd   : > { %906 = dma.done.wait (%p686_p7), %s524_s9, 128  }
  0xfe   : > { %908 = vsyncadd (%p686_p7), %s524_s9, 4294967168  ;;  %s24_s23 = sadd.s32 1, %s931_s23   ;;  %s1176_s26 = sld [smem:[#allocation14_spill]] }
  0xff   : > { %p21_p10 = scmp.ge.s32.totalorder %s24_s23, 4   ;;  %s1177_s20 = sld [smem:[#allocation18_spill]] }
 0x100   : > { %s1178_s12 = sld [smem:[#allocation16_spill]]  ;;  %s1179_s18 = smov %s915_s19 }
 0x101   : > { %s1181_s21 = smov %s927_s22 }
 0x102   :  { %23 = sbr.rel (!%p21_p10) target bundleno = 10 (0xa), region = 102 }
 0x104   : > { %s1180_s19 = smov %s1176_s26 }
 0x106   : > { %s1182_s22 = smov %s1178_s12 }
 0x107   :  { %530 = vsyncpa [#allocation3], 1 }
 0x108   :  { %532 = vsyncpa [#allocation3 + $0x1], 1 }
 0x109   :  { %533 = vsyncpa [#allocation6], 1 }
 0x10a   :  { %535 = vsyncpa [#allocation6 + $0x1], 1 }
 0x10b   :  { %536 = vsyncpa [#allocation4], 1 }
 0x10c   :  { %538 = vsyncpa [#allocation4 + $0x1], 1 }

</bundles_post_ra>
